<compile_context>
chip_gen: v7x
topology: tpu7x:2x2x1
jax: 0.10.0
libtpu: 0.0.40
codegen_flags: <defaults>
</compile_context>

<pallas_src>
import functools

import jax
import jax.numpy as jnp
from jax.experimental import pallas as pl
from jax.experimental.pallas import tpu as pltpu

X_DIM = 48          # x features
FC_IN = 1           # follow_count features (folded in as feature row 48)
K_IN = X_DIM + FC_IN
H1 = 16             # linear1 width (fused away)
H2 = 32             # hidden width
OUT = 1             # output width

DEFAULT_TILE_B = 4096


def _round_up(n, m):
    return ((n + m - 1) // m) * m


def _follower_kernel(xt_ref, w_ref, hb_ref, bout_ref, o_ref):
    """One batch tile, feature-major.

    xt_ref:   (49, TB) bf16  -- rows 0..47 = x features, row 48 = follow_count
    w_ref:    (32, 49) bf16  -- fused hidden weight (resident)
    hb_ref:   (32, 2)  f32   -- col 0 = fused hidden bias, col 1 = head weight
    bout_ref: (1,)     f32   -- head bias (SMEM scalar)
    o_ref:    (1, TB)  f32   -- lane-dense output row
    """
    # Single MXU matmul: (32,49)x(49,TB) -> (32,TB), f32 accumulation.
    h = jnp.dot(w_ref[...], xt_ref[...], preferred_element_type=jnp.float32)
    # Fused bias + ReLU on the VPU (broadcast along lanes).
    h = jnp.maximum(h + hb_ref[:, 0:1], 0.0)
    # Head Linear(32,1): per-lane weighted sublane reduce -> lane-dense (1, TB).
    o_ref[...] = (jnp.sum(h * hb_ref[:, 1:2], axis=0, keepdims=True)
                  + bout_ref[0])


@functools.partial(jax.jit, static_argnames=("tile_b",))
def follower_forward(x, follow_count, params, tile_b=DEFAULT_TILE_B):
    """x: (B, 48) f32, follow_count: (B, 1) f32 -> (B, 1) f32."""
    B = x.shape[0]
    w_t, hb, b_out = params

    # Fold fc into x, cast the MXU/stream operand to bf16, go feature-major.
    xt = jnp.concatenate([x, follow_count], axis=1).astype(jnp.bfloat16).T  # (49, B)

    # Tile selection: multiple of 128 lanes, capped so batches big enough for
    # megacore get >= 2-4 grid steps (v7x: 2 TensorCores share the grid).
    tb = min(tile_b, max(128, _round_up(pl.cdiv(B, 4), 128)))
    Bp = _round_up(B, tb)
    if Bp != B:
        xt = jnp.pad(xt, ((0, 0), (0, Bp - B)))
    grid = (Bp // tb,)

    cost = pl.CostEstimate(
        flops=2 * Bp * K_IN * H2 + 4 * Bp * H2,
        transcendentals=0,
        bytes_accessed=(2 * Bp * K_IN + 4 * Bp            # streamed in/out
                        + 2 * H2 * K_IN + 4 * H2 * 2 + 4))  # resident params

    out = pl.pallas_call(
        _follower_kernel,
        out_shape=jax.ShapeDtypeStruct((1, Bp), jnp.float32),
        grid=grid,
        in_specs=[
            pl.BlockSpec((K_IN, tb), lambda i: (0, i)),    # streamed activations
            pl.BlockSpec((H2, K_IN), lambda i: (0, 0)),    # resident fused weight
            pl.BlockSpec((H2, 2), lambda i: (0, 0)),       # resident bias|head wt
            pl.BlockSpec(memory_space=pltpu.MemorySpace.SMEM),  # head bias scalar
        ],
        out_specs=pl.BlockSpec((1, tb), lambda i: (0, i)), # lane-dense output
        compiler_params=pltpu.CompilerParams(
            dimension_semantics=("parallel",),
            vmem_limit_bytes=32 * 1024 * 1024),
        cost_estimate=cost,
    )(xt, w_t, hb, b_out)

    return out[0, :B].reshape(B, OUT)


def init_params(key):
    """Deterministic PyTorch-style (uniform +/- 1/sqrt(fan_in)) init."""
    ks = jax.random.split(key, 6)

    def unif(k, shape, fan_in):
        bound = 1.0 / jnp.sqrt(jnp.float32(fan_in))
        return jax.random.uniform(k, shape, jnp.float32, -bound, bound)

    # linear1: Linear(1, 16)
    w1 = unif(ks[0], (H1, FC_IN), FC_IN)          # (16, 1)
    b1 = unif(ks[1], (H1,), FC_IN)                # (16,)
    # model[0]: Linear(64, 32)
    w2 = unif(ks[2], (H2, X_DIM + H1), X_DIM + H1)  # (32, 64)
    b2 = unif(ks[3], (H2,), X_DIM + H1)             # (32,)
    # model[2]: Linear(32, 1)
    w3 = unif(ks[4], (OUT, H2), H2)               # (1, 32)
    b3 = unif(ks[5], (OUT,), H2)                  # (1,)

    # Exact algebraic fusion of the affine prefix (everything before the ReLU):
    #   W2 @ cat(x, W1@fc + b1) + b2
    #     = W2a @ x + (W2b @ W1) @ fc + (W2b @ b1 + b2)
    w2a = w2[:, :X_DIM]                           # (32, 48)  multiplies x
    w2b = w2[:, X_DIM:]                           # (32, 16)  multiplies linear1 out
    w_fc = w2b @ w1                               # (32, 1)   multiplies fc
    w_t = jnp.concatenate([w2a, w_fc], axis=1).astype(jnp.bfloat16)  # (32, 49)
    b_h = w2b @ b1 + b2                           # (32,)
    hb = jnp.stack([b_h, w3[0]], axis=1).astype(jnp.float32)  # (32, 2)
    b_out = b3.astype(jnp.float32)                # (1,) -> SMEM scalar

    kernel_params = (w_t, hb, b_out)
    raw_params = (w1, b1, w2, b2, w3, b3)
    return kernel_params, raw_params


def reference_forward(x, follow_count, raw_params):
    """Pure-JAX f32 reference matching the PyTorch forward exactly."""
    w1, b1, w2, b2, w3, b3 = raw_params
    f = follow_count @ w1.T + b1
    cat = jnp.concatenate([x, f], axis=1)
    h = jnp.maximum(cat @ w2.T + b2, 0.0)
    return h @ w3.T + b3


if __name__ == "__main__":
    key = jax.random.PRNGKey(0)
    k_x, k_fc, k_p = jax.random.split(key, 3)

    kernel_params, raw_params = init_params(k_p)

    # Small batch (single tile).
    B = 8
    x = jax.random.normal(k_x, (B, X_DIM), jnp.float32)
    follow_count = jax.random.normal(k_fc, (B, FC_IN), jnp.float32)

    out = jax.block_until_ready(follower_forward(x, follow_count, kernel_params))
    ref = reference_forward(x, follow_count, raw_params)
    assert out.shape == (B, OUT), out.shape
    # bf16 matmul operands -> looser tolerance than the pure-f32 version.
    assert jnp.allclose(out, ref, atol=2e-2, rtol=2e-2), (out, ref)

    # Ragged larger batch: exercises multi-step grid, resident weights, padding.
    B2 = 1000
    x2 = jax.random.normal(k_x, (B2, X_DIM), jnp.float32)
    fc2 = jax.random.normal(k_fc, (B2, FC_IN), jnp.float32)

    out2 = jax.block_until_ready(
        follower_forward(x2, fc2, kernel_params, tile_b=256))
    ref2 = reference_forward(x2, fc2, raw_params)
    assert out2.shape == (B2, OUT), out2.shape
    assert jnp.allclose(out2, ref2, atol=2e-2, rtol=2e-2)

    print("KERNEL_OK")
</pallas_src>

<mosaic_0001>
module attributes {stable_mosaic.version = 11 : i64} {
  func.func @_follower_kernel(%arg0: i32, %arg1: memref<49x128xbf16, #tpu.memory_space<vmem>>, %arg2: memref<32x49xbf16, #tpu.memory_space<vmem>>, %arg3: memref<32x2xf32, #tpu.memory_space<vmem>>, %arg4: memref<1xf32, #tpu.memory_space<smem>>, %arg5: memref<1x128xf32, #tpu.memory_space<vmem>>) attributes {dimension_semantics = [#tpu.dimension_semantics<parallel>], iteration_bounds = array<i64: 1>, scalar_prefetch = 0 : i64, scratch_operands = 0 : i64, tpu.core_type = #tpu.core_type<tc>, window_params = [{transform_indices = @transform_0, window_bounds = array<i64: 49, 128>}, {pipeline_mode = #tpu.pipeline_mode<synchronous>, transform_indices = @transform_1, window_bounds = array<i64: 32, 49>}, {pipeline_mode = #tpu.pipeline_mode<synchronous>, transform_indices = @transform_2, window_bounds = array<i64: 32, 2>}, {transform_indices = @transform_3, window_bounds = array<i64: 1>}, {transform_indices = @transform_4, window_bounds = array<i64: 1, 128>}]} {
    %c0 = arith.constant 0 : index
    %c0_0 = arith.constant 0 : index
    %0 = vector.load %arg2[%c0, %c0_0] : memref<32x49xbf16, #tpu.memory_space<vmem>>, vector<32x49xbf16>
    %c0_1 = arith.constant 0 : index
    %c0_2 = arith.constant 0 : index
    %1 = vector.load %arg1[%c0_1, %c0_2] : memref<49x128xbf16, #tpu.memory_space<vmem>>, vector<49x128xbf16>
    %cst = arith.constant dense<0.000000e+00> : vector<32x128xf32>
    %2 = tpu.matmul %0, %1, %cst {dimension_numbers = #tpu.dot_dimension_numbers<[1], [0], [0], [1], [0, 0, 1, 1], [], []>} : vector<32x49xbf16>, vector<49x128xbf16>, vector<32x128xf32> -> vector<32x128xf32>
    %c0_3 = arith.constant 0 : index
    %c0_4 = arith.constant 0 : index
    %3 = vector.load %arg3[%c0_3, %c0_4] : memref<32x2xf32, #tpu.memory_space<vmem>>, vector<32x1xf32>
    %4 = vector.broadcast %3 : vector<32x1xf32> to vector<32x128xf32>
    %5 = arith.addf %2, %4 : vector<32x128xf32>
    %cst_5 = arith.constant 0.000000e+00 : f32
    %6 = vector.broadcast %cst_5 : f32 to vector<32x128xf32>
    %7 = arith.maximumf %5, %6 : vector<32x128xf32>
    %c0_6 = arith.constant 0 : index
    %c1 = arith.constant 1 : index
    %8 = vector.load %arg3[%c0_6, %c1] : memref<32x2xf32, #tpu.memory_space<vmem>>, vector<32x1xf32>
    %9 = vector.broadcast %8 : vector<32x1xf32> to vector<32x128xf32>
    %10 = arith.mulf %7, %9 : vector<32x128xf32>
    %cst_7 = arith.constant dense<0.000000e+00> : vector<128xf32>
    %11 = vector.multi_reduction <add>, %10, %cst_7 [0] : vector<32x128xf32> to vector<128xf32>
    %12 = vector.shape_cast %11 : vector<128xf32> to vector<1x128xf32>
    %c0_8 = arith.constant 0 : index
    %13 = memref.load %arg4[%c0_8] : memref<1xf32, #tpu.memory_space<smem>>
    %14 = vector.broadcast %13 : f32 to vector<1x128xf32>
    %15 = arith.addf %12, %14 : vector<1x128xf32>
    %c0_9 = arith.constant 0 : index
    %c0_10 = arith.constant 0 : index
    %16 = vector.load %arg5[%c0_9, %c0_10] : memref<1x128xf32, #tpu.memory_space<vmem>>, vector<1x128xf32>
    tpu.vector_store %arg5[%c0_9, %c0_10], %15 {strides = array<i32>} : memref<1x128xf32, #tpu.memory_space<vmem>>, vector<1x128xf32>,
    return
  }
  func.func @transform_0(%arg0: i32) -> (i32, i32) {
    %c0_i32 = arith.constant 0 : i32
    %c0_i32_0 = arith.constant 0 : i32
    return %c0_i32, %arg0 : i32, i32
  }
  func.func @transform_1(%arg0: i32) -> (i32, i32) {
    %c0_i32 = arith.constant 0 : i32
    %c0_i32_0 = arith.constant 0 : i32
    %c0_i32_1 = arith.constant 0 : i32
    return %c0_i32, %c0_i32_0 : i32, i32
  }
  func.func @transform_2(%arg0: i32) -> (i32, i32) {
    %c0_i32 = arith.constant 0 : i32
    %c0_i32_0 = arith.constant 0 : i32
    %c0_i32_1 = arith.constant 0 : i32
    return %c0_i32, %c0_i32_0 : i32, i32
  }
  func.func @transform_3(%arg0: i32) -> i32 {
    %c0_i32 = arith.constant 0 : i32
    %c0_i32_0 = arith.constant 0 : i32
    return %c0_i32 : i32
  }
  func.func @transform_4(%arg0: i32) -> (i32, i32) {
    %c0_i32 = arith.constant 0 : i32
    %c0_i32_0 = arith.constant 0 : i32
    return %c0_i32, %arg0 : i32, i32
  }
}

</mosaic_0001>

<bundles_post_ra>
// kernel: follower_forward.1
= control target key start
LH: loop header
LB: loop body
LE: loop exit
PB: predicated region body
PF: predicated region fallthrough
CT: control target
= control target key end

     0   :  { %v226_v1 = vmov 0   ;;  %vm92_vm0 = vcmask 1040384   ;;  %vm85_vm1 = vcmask 400384   ;;  %v227_v13 = vmov 1   ;;  %s291_s0 = inlined_call_operand.vmem [shape: bf16[49,128], index: 0, kind: input, shape index: {}]   ;;  %s292_s1 = inlined_call_operand.vmem [shape: bf16[32,49], index: 1, kind: input, shape index: {}]   ;;  %s293_s2 = inlined_call_operand.vmem [shape: f32[32,2], index: 2, kind: input, shape index: {}]   ;;  %s294_s3 = inlined_call_operand.<no memory space> [shape: f32[1], index: 3, kind: input, shape index: {}]   ;;  %s295_s4 = inlined_call_operand.vmem [shape: f32[1,128], index: 4, kind: output, shape index: {}]  }
   0x1   :  { %v220_v0 = vld [vmem:[%s291_s0] sm:$0xff]   ;;  %217 = vset.pattern.permute.xlu1 %v226_v1  ;;  %216 = vset.pattern.permute.xlu0 %v226_v1  ;;  %v221_v2 = vld [vmem:[%s291_s0 + $0x8] sm:$0xff]   ;;  %v222_v3 = vld [vmem:[%s291_s0 + $0x10] sm:$0xff]   ;;  %v94_v6 = vsel %vm92_vm0, 65535, %v226_v1  ;;  %v181_v46 = vstv %s294_s3 }
   0x2   :  { %202 = vmatprep.subr.bf16.mxu0 %v220_v0  ;;  %v223_v4 = vld [vmem:[%s291_s0 + $0x18] ss:$0 sps:$4 sm:$0x11]   ;;  %v224_v5 = vld [vmem:[%s292_s1] sm:$0xff]   ;;  %v32_v7 = vld [vmem:[%s293_s2 + $0x10] sm:$0xff] }
   0x3   :  { %203 = vmatpush3.bf16.msra.mxu0 %v220_v0  ;;  %210 = vmatprep.mubr.msk.bf16.mxu0 %vm85_vm1, %v224_v5  ;;  %v30_v8 = vld [vmem:[%s293_s2] sm:$0xff]  ;;  %v33_v9 = vld [vmem:[%s293_s2 + $0x18] sm:$0xff]  ;;  %v96_v10 = vand.u32 %v223_v4, %v94_v6  ;;  %v31_v11 = vld [vmem:[%s293_s2 + $0x8] sm:$0xff] }
   0x4   :  { %204 = vmatprep.subr.bf16.mxu0 %v221_v2  ;;  %46 = vperm.xlu1 %217, %v32_v7   ;;  %v225_v12 = vld [vmem:[%s292_s1 + $0x8] sm:$0xff]  }
   0x5   :  { %36 = vperm.xlu0 %216, %v30_v8  }
   0x7   :  { %205 = vmatpush3.bf16.msra.mxu0 %v221_v2 }
   0x8   :  { %206 = vmatprep.subr.bf16.mxu0 %v222_v3  ;;  %51 = vperm.xlu1 %217, %v33_v9  }
   0x9   :  { %41 = vperm.xlu0 %216, %v31_v11  }
   0xb   :  { %207 = vmatpush3.bf16.msra.mxu0 %v222_v3 }
   0xc   :  { %208 = vmatprep.subr.bf16.mxu0 %v96_v10  ;;  %219 = vset.pattern.permute.xlu1 %v227_v13 }
   0xd   :  { %156 = vperm.xlu1 %219, %v31_v11   ;;  %218 = vset.pattern.permute.xlu0 %v227_v13 }
   0xe   :  { %152 = vperm.xlu0 %218, %v30_v8  }
   0xf   :  { %209 = vmatpush3.bf16.msra.mxu0 %v96_v10 }
  0x11   :  { %160 = vperm.xlu1 %219, %v32_v7  }
  0x12   :  { %211 = vmatmul.mubr.msk.bf16.vlgmr.msra.gmra.mrb[0].mxu0 %vm85_vm1, %v225_v12  ;;  %164 = vperm.xlu0 %218, %v33_v9  }
  0x83   :  { %v47_v14 = vpop.permute.xlu1 %46 }
  0x84   :  { %v37_v15 = vpop.permute.xlu0 %36 }
  0x87   :  { %v52_v16 = vpop.permute.xlu1 %51 }
  0x88   :  { %v42_v17 = vpop.permute.xlu0 %41 }
  0x8c   :  { %v157_v19 = vpop.permute.xlu1 %156 }
  0x8d   :  { %v153_v24 = vpop.permute.xlu0 %152 }
  0x90   :  { %v161_v31 = vpop.permute.xlu1 %160 }
  0x91   :  { %v165_v35 = vpop.permute.xlu0 %164 }
  0xe5   :  { %v212_v18 = vpop.f32.mrb[0].mxu0 }
  0xe6   :  { %v132_v20 = vpop.f32.mrb[1].mxu0  ;;  %v141_v21 = vadd.f32 %v212_v18, %v47_v14 }
  0xe7   :  { %v133_v22 = vadd.f32 %v132_v20, %v37_v15  ;;  %v213_v23 = vpop.f32.mrb[2].mxu0 }
  0xe8   :  { %v135_v25 = vpop.f32.mrb[3].mxu0  ;;  %v144_v27 = vadd.f32 %v213_v23, %v52_v16  ;;  %v149_v29 = vmax.f32 %v141_v21, 0.0 }
  0xe9   :  { %v147_v26 = vmax.f32 %v133_v22, 0.0  ;;  %v136_v28 = vadd.f32 %v135_v25, %v42_v17 }
  0xea   :  { %v150_v33 = vmax.f32 %v144_v27, 0.0  ;;  %v169_v36 = vmul.f32 %v161_v31, %v149_v29 }
  0xeb   :  { %v148_v30 = vmax.f32 %v136_v28, 0.0  ;;  %v167_v32 = vmul.f32 %v153_v24, %v147_v26 }
  0xec   :  { %v170_v39 = vmul.f32 %v165_v35, %v150_v33 }
  0xed   :  { %v168_v34 = vmul.f32 %v157_v19, %v148_v30 }
  0xef   :  { %v171_v37 = vadd.f32 %v168_v34, %v167_v32 }
  0xf1   :  { %v172_v38 = vadd.f32 %v171_v37, %v169_v36 }
  0xf3   :  { %v173_v40 = vadd.f32 %v172_v38, %v170_v39 }
  0xf5   :  { %v174_v41 = vrot.slane %v173_v40, 4 }
  0xf7   :  { %v175_v42 = vadd.f32 %v174_v41, %v173_v40 }
  0xf9   :  { %v176_v43 = vrot.slane %v175_v42, 2 }
  0xfb   :  { %v177_v44 = vadd.f32 %v176_v43, %v175_v42 }
  0xfd   :  { %v178_v45 = vrot.slane %v177_v44, 1 }
  0xff   :  { %v179_v47 = vadd.f32 %v178_v45, %v177_v44 }
 0x101   :  { %v182_v48 = vadd.f32 %v181_v46, %v179_v47 }
 0x103   :  { %183 = vst [vmem:[%s295_s4] sm:$0x1] %v182_v48 }

</bundles_post_ra>
